<compile_context>
chip_gen: v7x
topology: tpu7x:2x2x1
jax: 0.10.0
libtpu: 0.0.40
codegen_flags: <defaults>
</compile_context>

<pallas_src>
import jax
import jax.numpy as jnp
from jax.experimental import pallas as pl
from jax.experimental.pallas import tpu as pltpu


def _cdiv(a: int, b: int) -> int:
    return -(-a // b)


def _round_up(x: int, m: int) -> int:
    return _cdiv(x, m) * m


def _sublane_granularity(dtype) -> int:
    # f32 -> 8, bf16/f16 -> 16, int8/fp8 -> 32 (sublane packing).
    itemsize = jnp.dtype(dtype).itemsize
    return {4: 8, 2: 16, 1: 32}.get(itemsize, 8)


def _make_linear_kernel(compute_dtype, direct_out):
    """Builds kernel computing o = x @ w_t + b, accumulated over the K grid axis."""

    def kernel(x_ref, w_ref, b_ref, o_ref, *scratch):
        # x_ref: (tm, tk), w_ref: (tk, tn), b_ref: (1, tn), o_ref: (tm, tn)
        acc_ref = o_ref if direct_out else scratch[0]
        k = pl.program_id(2)

        @pl.when(k == 0)
        def _():
            # Initialize the resident accumulator with the bias row.
            acc_ref[...] = jnp.broadcast_to(
                b_ref[...].astype(jnp.float32), acc_ref.shape)

        xv = x_ref[...]
        wv = w_ref[...]
        if compute_dtype is not None:
            xv = xv.astype(compute_dtype)
            wv = wv.astype(compute_dtype)
        acc_ref[...] += jnp.dot(xv, wv, preferred_element_type=jnp.float32)

        if not direct_out:
            @pl.when(k == pl.num_programs(2) - 1)
            def _():
                o_ref[...] = acc_ref[...].astype(o_ref.dtype)

    return kernel


def linear_pallas(x, w_t, bias, *, compute_dtype=jnp.bfloat16,
                  tm_cap=512, tn_cap=512, tk_cap=1024):
    """y = x @ w_t + bias with x: (B, n_in), w_t: (n_in, n_out), bias: (n_out,)."""
    B, n_in = x.shape
    k_w, n_out = w_t.shape
    assert k_w == n_in and bias.shape == (n_out,)

    out_dtype = x.dtype
    m_gran = _sublane_granularity(x.dtype)  # out dtype == x dtype

    # --- Tile selection: minimize padding instead of cap-then-round-up. ---
    nbm = _cdiv(B, tm_cap)
    nbn = _cdiv(n_out, tn_cap)
    # v7x megacore: try to give each TensorCore at least one (i, j) block.
    if nbm * nbn == 1:
        if n_out >= 256:
            nbn = 2
        elif B >= 2 * m_gran:
            nbm = 2
    tm = _round_up(_cdiv(B, nbm), m_gran)
    tn = _round_up(_cdiv(n_out, nbn), 128)

    k128 = _round_up(n_in, 128)
    nbk = _cdiv(k128, tk_cap)
    tk = _round_up(_cdiv(k128, nbk), 128)
    kp = nbk * tk

    # Only the reduction (K) dim needs true zero padding; ragged M/N edge
    # blocks are fine (garbage lands only in masked-off output regions).
    if kp != n_in:
        x = jnp.pad(x, ((0, 0), (0, kp - n_in)))
        w_t = jnp.pad(w_t, ((0, kp - n_in), (0, 0)))
    bias2d = bias.reshape(1, n_out)

    grid = (_cdiv(B, tm), _cdiv(n_out, tn), nbk)

    direct_out = jnp.dtype(out_dtype) == jnp.dtype(jnp.float32)
    kernel = _make_linear_kernel(compute_dtype, direct_out)
    scratch_shapes = [] if direct_out else [pltpu.VMEM((tm, tn), jnp.float32)]

    return pl.pallas_call(
        kernel,
        out_shape=jax.ShapeDtypeStruct((B, n_out), out_dtype),
        grid_spec=pltpu.PrefetchScalarGridSpec(
            num_scalar_prefetch=0,
            grid=grid,
            in_specs=[
                pl.BlockSpec((tm, tk), lambda i, j, k: (i, k)),   # x
                pl.BlockSpec((tk, tn), lambda i, j, k: (k, j)),   # W.T (n_in, n_out)
                pl.BlockSpec((1, tn), lambda i, j, k: (0, j)),    # bias
            ],
            out_specs=pl.BlockSpec((tm, tn), lambda i, j, k: (i, j)),
            scratch_shapes=scratch_shapes,
        ),
        compiler_params=pltpu.CompilerParams(
            dimension_semantics=("parallel", "parallel", "arbitrary"),
            vmem_limit_bytes=40 * 1024 * 1024,
        ),
    )(x, w_t, bias2d)


class MLP:
    """Pallas equivalent of the PyTorch MLP(n_in, n_out) (a single nn.Linear)."""

    def __init__(self, weight, bias, *, compute_dtype=jnp.bfloat16):
        # One-time parameter prep: transpose W to (n_in, n_out) so the kernel's
        # matmul is canonical (m,k)x(k,n) — amortized over all forward calls.
        self.w_t = jnp.asarray(weight).T
        self.bias = jnp.asarray(bias)
        self.compute_dtype = compute_dtype

    def __call__(self, x):
        return linear_pallas(x, self.w_t, self.bias,
                             compute_dtype=self.compute_dtype)


if __name__ == "__main__":
    # Small shapes implied by the module: batch=8, n_in=32, n_out=16.
    B, N_IN, N_OUT = 8, 32, 16
    key = jax.random.PRNGKey(0)
    kx, kw, kb = jax.random.split(key, 3)
    bound = 1.0 / (N_IN ** 0.5)
    x = jax.random.normal(kx, (B, N_IN), dtype=jnp.float32)
    weight = jax.random.uniform(kw, (N_OUT, N_IN), minval=-bound, maxval=bound,
                                dtype=jnp.float32)
    bias = jax.random.uniform(kb, (N_OUT,), minval=-bound, maxval=bound,
                              dtype=jnp.float32)
    y_ref = x @ weight.T + bias

    # Default bf16-MXU path (f32 accumulation) — loosened tolerance.
    y = jax.block_until_ready(MLP(weight, bias)(x))
    assert y.shape == (B, N_OUT)
    assert jnp.allclose(y, y_ref, atol=2e-2, rtol=2e-2), "bf16 path mismatch (small)"

    # Exact f32 path for tight numerical verification.
    y_exact = jax.block_until_ready(MLP(weight, bias, compute_dtype=None)(x))
    assert jnp.allclose(y_exact, y_ref, atol=1e-5, rtol=1e-5), "f32 path mismatch (small)"

    # Larger, non-tile-aligned shapes: exercises multi-block (i, j) grid,
    # K-only padding, ragged M/N edge blocks, and the megacore split.
    B2, NI2, NO2 = 300, 1000, 520
    k1, k2, k3 = jax.random.split(jax.random.PRNGKey(1), 3)
    x2 = jax.random.normal(k1, (B2, NI2), dtype=jnp.float32)
    w2 = jax.random.normal(k2, (NO2, NI2), dtype=jnp.float32) * 0.02
    b2 = jax.random.normal(k3, (NO2,), dtype=jnp.float32)
    y2_ref = x2 @ w2.T + b2

    y2 = jax.block_until_ready(MLP(w2, b2)(x2))
    assert y2.shape == (B2, NO2)
    assert jnp.allclose(y2, y2_ref, atol=5e-2, rtol=5e-2), "bf16 path mismatch (large)"

    y2_exact = jax.block_until_ready(MLP(w2, b2, compute_dtype=None)(x2))
    assert jnp.allclose(y2_exact, y2_ref, atol=1e-3, rtol=1e-3), "f32 path mismatch (large)"

    # bf16-native inputs/outputs: exercises the scratch-accumulator output
    # path (non-f32 output dtype) and halved HBM streaming of x / W.
    y3 = jax.block_until_ready(
        MLP(w2.astype(jnp.bfloat16), b2.astype(jnp.bfloat16))(x2.astype(jnp.bfloat16)))
    assert y3.dtype == jnp.bfloat16
    assert jnp.allclose(y3.astype(jnp.float32), y2_ref, atol=5e-2, rtol=5e-2), \
        "bf16-io path mismatch"

    print("KERNEL_OK")
</pallas_src>

<mosaic_0001>
module attributes {stable_mosaic.version = 11 : i64} {
  func.func @kernel(%arg0: i32, %arg1: i32, %arg2: i32, %arg3: memref<8x128xf32, #tpu.memory_space<vmem>>, %arg4: memref<128x128xf32, #tpu.memory_space<vmem>>, %arg5: memref<1x128xf32, #tpu.memory_space<vmem>>, %arg6: memref<8x128xf32, #tpu.memory_space<vmem>>) attributes {dimension_semantics = [#tpu.dimension_semantics<parallel>, #tpu.dimension_semantics<parallel>, #tpu.dimension_semantics<arbitrary>], iteration_bounds = array<i64: 1, 1, 1>, scalar_prefetch = 0 : i64, scratch_operands = 0 : i64, tpu.core_type = #tpu.core_type<tc>, window_params = [{transform_indices = @transform_0, window_bounds = array<i64: 8, 128>}, {transform_indices = @transform_1, window_bounds = array<i64: 128, 128>}, {transform_indices = @transform_2, window_bounds = array<i64: 1, 128>}, {transform_indices = @transform_3, window_bounds = array<i64: 8, 128>}]} {
    %c0_i32 = arith.constant 0 : i32
    %0 = arith.cmpi eq, %arg2, %c0_i32 : i32
    %1 = arith.extui %0 : i1 to i32
    %c0_i32_0 = arith.constant 0 : i32
    %2 = arith.cmpi ne, %1, %c0_i32_0 : i32
    scf.if %2 {
      %c0_8 = arith.constant 0 : index
      %c0_9 = arith.constant 0 : index
      %11 = vector.load %arg5[%c0_8, %c0_9] : memref<1x128xf32, #tpu.memory_space<vmem>>, vector<1x128xf32>
      %12 = vector.shape_cast %11 : vector<1x128xf32> to vector<1x128xf32>
      %13 = vector.broadcast %12 : vector<1x128xf32> to vector<8x128xf32>
      %c0_10 = arith.constant 0 : index
      %c0_11 = arith.constant 0 : index
      %14 = vector.load %arg6[%c0_10, %c0_11] : memref<8x128xf32, #tpu.memory_space<vmem>>, vector<8x128xf32>
      tpu.vector_store %arg6[%c0_10, %c0_11], %13 {strides = array<i32>} : memref<8x128xf32, #tpu.memory_space<vmem>>, vector<8x128xf32>,
    } else {
    }
    %c0 = arith.constant 0 : index
    %c0_1 = arith.constant 0 : index
    %3 = vector.load %arg3[%c0, %c0_1] : memref<8x128xf32, #tpu.memory_space<vmem>>, vector<8x128xf32>
    %c0_2 = arith.constant 0 : index
    %c0_3 = arith.constant 0 : index
    %4 = vector.load %arg4[%c0_2, %c0_3] : memref<128x128xf32, #tpu.memory_space<vmem>>, vector<128x128xf32>
    %5 = arith.truncf %3 : vector<8x128xf32> to vector<8x128xbf16>
    %6 = arith.truncf %4 : vector<128x128xf32> to vector<128x128xbf16>
    %c0_4 = arith.constant 0 : index
    %c0_5 = arith.constant 0 : index
    %7 = vector.load %arg6[%c0_4, %c0_5] : memref<8x128xf32, #tpu.memory_space<vmem>>, vector<8x128xf32>
    %cst = arith.constant dense<0.000000e+00> : vector<8x128xf32>
    %8 = tpu.matmul %5, %6, %cst {dimension_numbers = #tpu.dot_dimension_numbers<[1], [0], [0], [1], [0, 0, 1, 1], [], []>} : vector<8x128xbf16>, vector<128x128xbf16>, vector<8x128xf32> -> vector<8x128xf32>
    %9 = arith.addf %7, %8 : vector<8x128xf32>
    %c0_6 = arith.constant 0 : index
    %c0_7 = arith.constant 0 : index
    %10 = vector.load %arg6[%c0_6, %c0_7] : memref<8x128xf32, #tpu.memory_space<vmem>>, vector<8x128xf32>
    tpu.vector_store %arg6[%c0_6, %c0_7], %9 {strides = array<i32>} : memref<8x128xf32, #tpu.memory_space<vmem>>, vector<8x128xf32>,
    return
  }
  func.func @transform_0(%arg0: i32, %arg1: i32, %arg2: i32) -> (i32, i32) {
    %c0_i32 = arith.constant 0 : i32
    return %arg0, %arg2 : i32, i32
  }
  func.func @transform_1(%arg0: i32, %arg1: i32, %arg2: i32) -> (i32, i32) {
    %c0_i32 = arith.constant 0 : i32
    return %arg2, %arg1 : i32, i32
  }
  func.func @transform_2(%arg0: i32, %arg1: i32, %arg2: i32) -> (i32, i32) {
    %c0_i32 = arith.constant 0 : i32
    %c0_i32_0 = arith.constant 0 : i32
    return %c0_i32, %arg1 : i32, i32
  }
  func.func @transform_3(%arg0: i32, %arg1: i32, %arg2: i32) -> (i32, i32) {
    %c0_i32 = arith.constant 0 : i32
    return %arg0, %arg1 : i32, i32
  }
}

</mosaic_0001>

<bundles_post_ra>
// kernel: tpu_custom_call.1
= control target key start
LH: loop header
LB: loop body
LE: loop exit
PB: predicated region body
PF: predicated region fallthrough
CT: control target
= control target key end

     0   :  { %v168_v3 = vmov 0.0   ;;  %vm169_vm0 = vmmov 0   ;;  %s257_s0 = inlined_call_operand.vmem [shape: f32[8,128], index: 0, kind: input, shape index: {}]   ;;  %s258_s1 = inlined_call_operand.vmem [shape: f32[128,16], index: 1, kind: input, shape index: {}]   ;;  %s259_s2 = inlined_call_operand.vmem [shape: f32[1,16], index: 2, kind: input, shape index: {}]   ;;  %s260_s3 = inlined_call_operand.hbm [shape: f32[8,16], index: 3, kind: output, shape index: {}]  }
   0x1   :  { %v29_v0 = vld [vmem:[%s258_s1] sm:$0xff]  ;;  %v30_v1 = vld [vmem:[%s258_s1 + $0x8] sm:$0xff]  ;;  %v31_v2 = vld [vmem:[%s258_s1 + $0x10] sm:$0xff]  ;;  %121 = vmatprep.subr.bf16.mxu0 %v168_v3  ;;  %137 = vmatprep.mubr.msk.bf16.mxu0 %vm169_vm0, %v168_v3 }
   0x2   :  { %v46_v4 = vpack.c.bf16 %v30_v1, %v29_v0  ;;  %v32_v5 = vld [vmem:[%s258_s1 + $0x18] sm:$0xff]  ;;  %v33_v7 = vld [vmem:[%s258_s1 + $0x20] sm:$0xff]  ;;  %v34_v8 = vld [vmem:[%s258_s1 + $0x28] sm:$0xff] }
   0x3   :  { %v47_v6 = vpack.c.bf16 %v32_v5, %v31_v2 }
   0x4   :  { %122 = vmatpush3.bf16.msra.mxu0 %v46_v4 }
   0x5   :  { %123 = vmatprep.subr.bf16.mxu0 %v168_v3 }
   0x6   :  { %8 = vsyncpa [#allocation3], 0  ;;  %v48_v9 = vpack.c.bf16 %v34_v8, %v33_v7  ;;  %v35_v10 = vld [vmem:[%s258_s1 + $0x30] sm:$0xff]  ;;  %v36_v11 = vld [vmem:[%s258_s1 + $0x38] sm:$0xff]  ;;  %s170_s21 = smov [#allocation2]  }
   0x7   :  { %v49_v12 = vpack.c.bf16 %v36_v11, %v35_v10  ;;  %v37_v13 = vld [vmem:[%s258_s1 + $0x40] sm:$0xff]  ;;  %v38_v14 = vld [vmem:[%s258_s1 + $0x48] sm:$0xff]  ;;  %v39_v16 = vld [vmem:[%s258_s1 + $0x50] sm:$0xff]  ;;  %s103_s22 = sshll.u32 %s170_s21, 4  ;;  %s104_s22 = int_to_ptr.vmem [resolvable:$true] %s103_s22 }
   0x8   :  { %124 = vmatpush3.bf16.msra.mxu0 %v47_v6  ;;  %v50_v15 = vpack.c.bf16 %v38_v14, %v37_v13  ;;  %v40_v17 = vld [vmem:[%s258_s1 + $0x58] sm:$0xff]  ;;  %v41_v19 = vld [vmem:[%s258_s1 + $0x60] sm:$0xff]  ;;  %v42_v20 = vld [vmem:[%s258_s1 + $0x68] sm:$0xff]  ;;  %p149_p1 = scmp.lt.s32.totalorder %s104_s22, %s104_s22 }
   0x9   :  { %125 = vmatprep.subr.bf16.mxu0 %v168_v3  ;;  %v51_v18 = vpack.c.bf16 %v40_v17, %v39_v16  ;;  %v52_v21 = vpack.c.bf16 %v42_v20, %v41_v19  ;;  %v43_v22 = vld [vmem:[%s258_s1 + $0x70] sm:$0xff]  ;;  %v44_v23 = vld [vmem:[%s258_s1 + $0x78] sm:$0xff]  ;;  %v28_v25 = vld [vmem:[%s257_s0] sm:$0xff]  ;;  %s144_s1 = scalar_lea.vmem %s104_s22, 128 }
   0xa   :  { %v53_v24 = vpack.c.bf16 %v44_v23, %v43_v22  ;;  %v45_v26 = vpack.c.bf16 %v28_v25, %v28_v25  ;;  %v111_v27 = vld [vmem:[%s259_s2] ss:$0 sm:$0xff]  ;;  %p145_p0 = scmp.ne.s32.totalorder %s104_s22, %s144_s1  ;;  %p150_p2 = scmp.lt.s32.totalorder %s144_s1, %s144_s1 }
   0xc   :  { %126 = vmatpush3.bf16.msra.mxu0 %v48_v9  ;;  %p151_p3 = por %p150_p2, %p149_p1 }
   0xd   :  { %127 = vmatprep.subr.bf16.mxu0 %v168_v3 }
   0xe   :  { %p152_p4 = pnand %p151_p3, %p145_p0 }
  0x10   :  { %128 = vmatpush3.bf16.msra.mxu0 %v49_v12 }
  0x11   :  { %129 = vmatprep.subr.bf16.mxu0 %v168_v3 }
  0x14   :  { %130 = vmatpush3.bf16.msra.mxu0 %v50_v15 }
  0x15   :  { %131 = vmatprep.subr.bf16.mxu0 %v168_v3 }
  0x18   :  { %132 = vmatpush3.bf16.msra.mxu0 %v51_v18 }
  0x19   :  { %133 = vmatprep.subr.bf16.mxu0 %v168_v3 }
  0x1c   :  { %134 = vmatpush3.bf16.msra.mxu0 %v52_v21 }
  0x1d   :  { %135 = vmatprep.subr.bf16.mxu0 %v168_v3 }
  0x20   :  { %136 = vmatpush3.bf16.msra.mxu0 %v53_v24 }
  0x23   :  { %138 = vmatmul.mubr.bf16.vlgmr.msra.gmra.mrb[0].mxu0 %v45_v26 }
  0xf6   :  { %v89_v28 = vpop.f32.mrb[0].mxu0 }
  0xf7   :  { %v95_v29 = vadd.f32 %v111_v27, %v89_v28  ;;  %v139_v30 = vpop.f32.mrb[1].mxu0 }
  0xf8   :  { %v92_v31 = vpop.f32.mrb[2].mxu0 }
  0xf9   :  { %96 = vst [vmem:[#allocation2] sm:$0xff] %v95_v29  ;;  %v140_v32 = vpop.f32.mrb[3].mxu0 }
  0xfa   :  { %155 = shalt.err (!%p152_p4)
}
  0xfb   :  { %s156_s2 = scalar_lea.hbm %s260_s3, 128 }
  0xfc   :  { %p157_p5 = scmp.ne.s32.totalorder %s260_s3, %s156_s2  ;;  %p160_p6 = scmp.lt.u32.totalorder %s156_s2, %s260_s3 }
  0xfe   :  { %p162_p7 = pnand %p160_p6, %p157_p5 }
 0x100   :  { %165 = shalt.err (!%p162_p7)
}
 0x101   :  { %106 = dma.vmem_to_hbm [thread:$0]  %s104_s22, 128, %s260_s3, [#allocation3]  }
 0x102   :  { %166 = dma.done.wait [#allocation3], 128  }
 0x103   :  { %167 = vsyncadd [#allocation3], 4294967168 }
 0x104   :  { %110 = vsyncpa [#allocation3], 1 }

</bundles_post_ra>
